<compile_context>
chip_gen: v7x
topology: tpu7x:2x2x1
jax: 0.10.0
libtpu: 0.0.40
codegen_flags: <defaults>
</compile_context>

<pallas_src>
import math

import jax
import jax.numpy as jnp
from jax.experimental import pallas as pl
from jax.experimental.pallas import tpu as pltpu

_LANE = 128
_SUBLANE = 8


def _round_up(x, m):
    return ((x + m - 1) // m) * m


def _pick_tile(n, candidates=(512, 256, 128)):
    for c in candidates:
        if n % c == 0:
            return c
    return n


def _pick_tm(batch):
    """Batch tile: minimize zero-row padding first, then prefer >=2 grid steps
    (v7x has 2 TensorCores), then prefer the larger tile."""
    if batch <= _LANE:
        return _round_up(batch, _SUBLANE)

    def key(tm):
        padded = _round_up(batch, tm)
        return (padded - batch, 0 if padded // tm >= 2 else 1, -tm)

    return min((256, 128), key=key)


def _vmem_cap_bytes():
    # Generation-aware cap: ~75% of physical VMEM (v7x has only 64 MiB / core;
    # v5e/v6e have 128 MiB, so this is only restrictive where it matters).
    try:
        return int(0.75 * pltpu.get_tpu_info().vmem_capacity_bytes)
    except Exception:
        return 48 * 1024 * 1024


def _vmem_limit_bytes(footprint, cap):
    # Real footprint + ~25% headroom for Mosaic internal scratch, floored at 16 MiB.
    return int(min(max(int(footprint * 1.25) + (2 << 20), 16 << 20), cap))


try:
    import inspect
    _HAS_PIPELINE_MODE = ("pipeline_mode" in inspect.signature(pl.BlockSpec).parameters
                          and hasattr(pl, "Buffered"))
except Exception:  # pragma: no cover - defensive; default double-buffering still correct
    _HAS_PIPELINE_MODE = False


def _resident_spec(shape, index_map):
    """BlockSpec for a constant-index (weight-like) operand: single-buffered so it
    occupies 1x (not the default 2x) of its size in VMEM."""
    if _HAS_PIPELINE_MODE:
        return pl.BlockSpec(shape, index_map, pipeline_mode=pl.Buffered(1))
    return pl.BlockSpec(shape, index_map)


def _softplus(z):
    # Branch-free, numerically stable; equals torch.nn.Softplus(beta=1, threshold=20).
    return jnp.maximum(z, 0.0) + jnp.log1p(jnp.exp(-jnp.abs(z)))


# ---------------------------------------------------------------------------
# Fused linear path: Softplus(x_all @ W_blockdiag + b) for all views at once
# ---------------------------------------------------------------------------
def _linear_softplus_kernel(x_ref, w_ref, b_ref, o_ref):
    # Weight fully resident: one MXU matmul per batch tile, no reduction axis.
    z = jnp.dot(x_ref[...], w_ref[...], preferred_element_type=jnp.float32) + b_ref[...]
    o_ref[...] = _softplus(z).astype(o_ref.dtype)


def _linear_softplus_ktiled_kernel(x_ref, w_ref, b_ref, o_ref, acc_ref):
    k = pl.program_id(2)

    @pl.when(k == 0)
    def _init():
        acc_ref[...] = jnp.zeros_like(acc_ref)

    acc_ref[...] += jnp.dot(x_ref[...], w_ref[...], preferred_element_type=jnp.float32)

    @pl.when(k == pl.num_programs(2) - 1)
    def _store():
        o_ref[...] = _softplus(acc_ref[...] + b_ref[...]).astype(o_ref.dtype)


def linear_softplus(x, wt, b2):
    """Softplus(x @ wt + b2).

    x : (B, D)  activations in the compute dtype (bf16 by default)
    wt: (D, N)  pre-transposed block-diagonal weight (compute dtype), N % 128 == 0
    b2: (1, N)  f32 bias
    returns (B, N) f32
    """
    B, D = x.shape
    D_w, N = wt.shape
    assert D == D_w and b2.shape == (1, N) and N % _LANE == 0
    its = jnp.dtype(x.dtype).itemsize
    cap = _vmem_cap_bytes()

    tm = _pick_tm(B)
    B_pad = _round_up(B, tm)
    if B_pad != B:
        x = jnp.pad(x, ((0, B_pad - B), (0, 0)))

    # Preferred path: whole block-diagonal weight resident in VMEM (single-buffered),
    # no K axis, no accumulator -> weight streamed from HBM exactly once per forward.
    resident_fp = (2 * tm * D * its          # x blocks (double-buffered)
                   + D * N * its             # weight (single-buffered)
                   + N * 4                   # bias (f32)
                   + 2 * tm * N * 4)         # f32 output blocks (double-buffered)
    if int(resident_fp * 1.25) + (2 << 20) <= cap:
        out = pl.pallas_call(
            _linear_softplus_kernel,
            out_shape=jax.ShapeDtypeStruct((B_pad, N), jnp.float32),
            grid_spec=pltpu.PrefetchScalarGridSpec(
                num_scalar_prefetch=0,
                grid=(B_pad // tm,),
                in_specs=[
                    pl.BlockSpec((tm, D), lambda i: (i, 0)),     # activations: stream
                    _resident_spec((D, N), lambda i: (0, 0)),    # weight: resident
                    _resident_spec((1, N), lambda i: (0, 0)),    # bias: resident
                ],
                out_specs=pl.BlockSpec((tm, N), lambda i: (i, 0)),
            ),
            compiler_params=pltpu.CompilerParams(
                dimension_semantics=("parallel",),
                vmem_limit_bytes=_vmem_limit_bytes(resident_fp, cap),
            ),
        )(x, wt, b2)
        return out[:B] if B_pad != B else out

    # Fallback for very large D*N (weight does not fit VMEM): classic (i, j, k)
    # tiling with an f32 VMEM accumulator and pl.when init/store on the k axis.
    # (Padding here would ideally be hoisted to __init__ if this path were ever hot.)
    tk = 512
    tn = _pick_tile(N)
    D_pad = _round_up(D, tk)
    x = jnp.pad(x, ((0, 0), (0, D_pad - D)))
    wt = jnp.pad(wt, ((0, D_pad - D), (0, 0)))
    grid = (B_pad // tm, N // tn, D_pad // tk)
    fp = (2 * (tm * tk + tk * tn) * its + 2 * tn * 4 + 2 * tm * tn * 4 + tm * tn * 4)
    out = pl.pallas_call(
        _linear_softplus_ktiled_kernel,
        out_shape=jax.ShapeDtypeStruct((B_pad, N), jnp.float32),
        grid_spec=pltpu.PrefetchScalarGridSpec(
            num_scalar_prefetch=0,
            grid=grid,
            in_specs=[
                pl.BlockSpec((tm, tk), lambda i, j, k: (i, k)),
                pl.BlockSpec((tk, tn), lambda i, j, k: (k, j)),
                pl.BlockSpec((1, tn), lambda i, j, k: (0, j)),
            ],
            out_specs=pl.BlockSpec((tm, tn), lambda i, j, k: (i, j)),
            scratch_shapes=[pltpu.VMEM((tm, tn), jnp.float32)],
        ),
        compiler_params=pltpu.CompilerParams(
            dimension_semantics=("parallel", "parallel", "arbitrary"),
            vmem_limit_bytes=_vmem_limit_bytes(fp, cap),
        ),
    )(x, wt, b2)
    return out[:B] if B_pad != B else out


# ---------------------------------------------------------------------------
# Fused bilinear path: Softplus( ((x1 @ W2d) * (x2 @ Rep)) @ Sel + b )
#   W2d[i, k*J+j] = W[k,i,j]  (block-diag over views), Rep replicates x2 over k,
#   Sel block-sums the J products of class k into its compact output column.
# ---------------------------------------------------------------------------
def _bilinear_softplus_kernel(x1_ref, x2_ref, w_ref, rep_ref, sel_ref, b_ref, o_ref):
    t = jnp.dot(x1_ref[...], w_ref[...], preferred_element_type=jnp.float32)
    r = jnp.dot(x2_ref[...], rep_ref[...], preferred_element_type=jnp.float32)
    p = (t * r).astype(sel_ref.dtype)   # bf16 product feeds the selector matmul
    z = jnp.dot(p, sel_ref[...], preferred_element_type=jnp.float32) + b_ref[...]
    o_ref[...] = _softplus(z).astype(o_ref.dtype)


def bilinear_softplus(x1, x2, w2d, rep, sel, b2):
    """x1: (B, I), x2: (B, J); structural matrices packed/padded at init. -> (B, N) f32."""
    B, I = x1.shape
    B2, J = x2.shape
    assert B == B2
    I_w, P = w2d.shape
    P_s, N = sel.shape
    assert I_w == I and rep.shape == (J, P) and P_s == P and b2.shape == (1, N)
    its = jnp.dtype(x1.dtype).itemsize
    cap = _vmem_cap_bytes()

    tm = _pick_tm(B)

    def footprint(tm_):
        return (2 * tm_ * (I + J) * its              # x1/x2 blocks (double-buffered)
                + (I * P + J * P + P * N) * its      # w2d/rep/sel (single-buffered)
                + N * 4                              # bias (f32)
                + 2 * tm_ * N * 4                    # f32 output blocks
                + 3 * tm_ * P * 4)                   # f32 intermediates t, r, t*r

    while tm > _SUBLANE and int(footprint(tm) * 1.25) + (2 << 20) > cap:
        tm = max(_SUBLANE, tm // 2)
    # TODO(synk): if the resident structural matrices alone exceed the VMEM budget
    # (very large out_dim * sum(J_v) on v7x's 64 MiB), tile the P axis with an f32
    # accumulator instead of keeping w2d/rep/sel fully resident.

    B_pad = _round_up(B, tm)
    if B_pad != B:
        x1 = jnp.pad(x1, ((0, B_pad - B), (0, 0)))
        x2 = jnp.pad(x2, ((0, B_pad - B), (0, 0)))

    out = pl.pallas_call(
        _bilinear_softplus_kernel,
        out_shape=jax.ShapeDtypeStruct((B_pad, N), jnp.float32),
        grid_spec=pltpu.PrefetchScalarGridSpec(
            num_scalar_prefetch=0,
            grid=(B_pad // tm,),
            in_specs=[
                pl.BlockSpec((tm, I), lambda i: (i, 0)),    # x1: streams over batch
                pl.BlockSpec((tm, J), lambda i: (i, 0)),    # x2: streams over batch
                _resident_spec((I, P), lambda i: (0, 0)),   # block-diag W2d
                _resident_spec((J, P), lambda i: (0, 0)),   # replication (0/1)
                _resident_spec((P, N), lambda i: (0, 0)),   # selector (0/1)
                _resident_spec((1, N), lambda i: (0, 0)),   # bias (f32)
            ],
            out_specs=pl.BlockSpec((tm, N), lambda i: (i, 0)),
        ),
        compiler_params=pltpu.CompilerParams(
            dimension_semantics=("parallel",),
            vmem_limit_bytes=_vmem_limit_bytes(footprint(tm), cap),
        ),
    )(x1, x2, w2d, rep, sel, b2)
    return out[:B] if B_pad != B else out


# ---------------------------------------------------------------------------
# TrustNet wrapper: all views fused into a single pallas_call per forward.
# ---------------------------------------------------------------------------
class TrustNetPallas:
    """compute_dtype governs the MXU operand dtype (bf16 default, f32 opt-in for a
    bit-tighter match); accumulation / bias / softplus are always f32."""

    def __init__(self, key, n_views, in_dims, out_dim, bi=False,
                 compute_dtype=jnp.bfloat16):
        assert len(in_dims) == n_views
        self.n_views = n_views
        self.out_dim = out_dim
        self.bi = bi
        self.compute_dtype = compute_dtype

        # Compacted output layout: view v owns columns [v*C, (v+1)*C); only the
        # total width is padded (once) to a 128 multiple.
        n_total = n_views * out_dim
        self.n_pad = _round_up(n_total, _LANE)

        # Per-view torch-layout parameters (kept in f32 for the reference check).
        self.params = []
        for v in range(n_views):
            key, kw, kb = jax.random.split(key, 3)
            if bi:
                i1, i2 = in_dims[v]
                bound = 1.0 / math.sqrt(i1)
                w = jax.random.uniform(kw, (out_dim, i1, i2), jnp.float32, -bound, bound)
                b = jax.random.uniform(kb, (out_dim,), jnp.float32, -bound, bound)
            else:
                d = in_dims[v]
                bound = 1.0 / math.sqrt(d)
                w = jax.random.uniform(kw, (out_dim, d), jnp.float32, -bound, bound)
                b = jax.random.uniform(kb, (out_dim,), jnp.float32, -bound, bound)
            self.params.append((w, b))

        # All layout transforms (transpose / reshape / block-diag / padding / casts)
        # hoisted here; the forward path only concatenates inputs.
        if bi:
            i_dims = [d[0] for d in in_dims]
            j_dims = [d[1] for d in in_dims]
            self.i_total = sum(i_dims)
            self.j_total = sum(j_dims)
            p_total = sum(out_dim * j for j in j_dims)
            p_pad = _round_up(p_total, _LANE)

            w_bd = jnp.zeros((self.i_total, p_pad), jnp.float32)
            rep = jnp.zeros((self.j_total, p_pad), jnp.float32)
            sel = jnp.zeros((p_pad, self.n_pad), jnp.float32)
            bias = jnp.zeros((1, self.n_pad), jnp.float32)
            io = jo = po = 0
            for v in range(n_views):
                w, b = self.params[v]
                i1, i2 = in_dims[v]
                p_v = out_dim * i2
                # (K, I, J) -> (I, K*J) stripe of the block-diagonal weight.
                w2d = jnp.transpose(w, (1, 0, 2)).reshape(i1, p_v)
                w_bd = w_bd.at[io:io + i1, po:po + p_v].set(w2d)
                # Column (k*J + j) of view v copies x2_v[:, j].
                rep_v = jnp.tile(jnp.eye(i2, dtype=jnp.float32), (1, out_dim))
                rep = rep.at[jo:jo + i2, po:po + p_v].set(rep_v)
                # Sums the J products of class k into compact column v*C + k.
                sel_v = jnp.repeat(jnp.eye(out_dim, dtype=jnp.float32), i2, axis=0)
                c0 = v * out_dim
                sel = sel.at[po:po + p_v, c0:c0 + out_dim].set(sel_v)
                bias = bias.at[0, c0:c0 + out_dim].set(b)
                io, jo, po = io + i1, jo + i2, po + p_v
            # rep/sel are 0/1 matrices -> exact in bf16; only w is quantized.
            self.w_bd = w_bd.astype(compute_dtype)
            self.rep = rep.astype(compute_dtype)
            self.sel = sel.astype(compute_dtype)
            self.bias = bias
        else:
            self.d_total = sum(in_dims)
            w_bd = jnp.zeros((self.d_total, self.n_pad), jnp.float32)
            bias = jnp.zeros((1, self.n_pad), jnp.float32)
            off = 0
            for v in range(n_views):
                w, b = self.params[v]
                d = in_dims[v]
                c0 = v * out_dim
                w_bd = w_bd.at[off:off + d, c0:c0 + out_dim].set(w.T)
                bias = bias.at[0, c0:c0 + out_dim].set(b)
                off += d
            self.w_bd = w_bd.astype(compute_dtype)
            self.bias = bias

    def __call__(self, inp):
        dt = self.compute_dtype
        if self.bi:
            x1 = jnp.concatenate([inp[v][0].astype(dt) for v in range(self.n_views)], axis=1)
            x2 = jnp.concatenate([inp[v][1].astype(dt) for v in range(self.n_views)], axis=1)
            fused = bilinear_softplus(x1, x2, self.w_bd, self.rep, self.sel, self.bias)
        else:
            x = jnp.concatenate([inp[v].astype(dt) for v in range(self.n_views)], axis=1)
            fused = linear_softplus(x, self.w_bd, self.bias)
        # Per-view slices of the compact, lane-dense evidence slab (outside the kernel).
        C = self.out_dim
        return {v: fused[:, v * C:(v + 1) * C] for v in range(self.n_views)}


# ---------------------------------------------------------------------------
# Pure-JAX references for sanity checks
# ---------------------------------------------------------------------------
def _ref_classifier(x, w, b):
    return jax.nn.softplus(x @ w.T + b)


def _ref_feater(x1, x2, w, b):
    return jax.nn.softplus(jnp.einsum("ni,kij,nj->nk", x1, w, x2) + b)


if __name__ == "__main__":
    key = jax.random.PRNGKey(0)
    n_views, out_dim, batch = 2, 5, 8

    # ----- bi=False path: fused per-view nn.Linear + Softplus -----
    in_dims = [32, 24]
    key, kmodel, *kx = jax.random.split(key, 2 + n_views)
    inp = {v: jax.random.normal(kx[v], (batch, in_dims[v]), jnp.float32)
           for v in range(n_views)}

    # f32 MXU operands (opt-in): tolerance allows for the MXU's multi-pass bf16
    # handling of f32 operands.
    net_f32 = TrustNetPallas(kmodel, n_views, in_dims, out_dim, bi=False,
                             compute_dtype=jnp.float32)
    ev = net_f32(inp)
    jax.block_until_ready(ev)
    for v in range(n_views):
        ref = _ref_classifier(inp[v], *net_f32.params[v])
        assert ev[v].shape == (batch, out_dim)
        assert jnp.allclose(ev[v], ref, atol=2e-2, rtol=2e-2), f"f32 view {v} mismatch"

    # bf16 MXU operands (default fast path): looser tolerance for the quantization.
    net_bf16 = TrustNetPallas(kmodel, n_views, in_dims, out_dim, bi=False)
    ev16 = net_bf16(inp)
    jax.block_until_ready(ev16)
    for v in range(n_views):
        ref = _ref_classifier(inp[v], *net_bf16.params[v])
        assert ev16[v].shape == (batch, out_dim)
        assert jnp.allclose(ev16[v], ref, atol=5e-2, rtol=5e-2), f"bf16 view {v} mismatch"

    # ----- bi=True path: fused per-view nn.Bilinear + Softplus -----
    bi_in_dims = [(16, 12), (20, 8)]
    key, kmodel2, *kx2 = jax.random.split(key, 2 + n_views)
    inp_bi = {}
    for v in range(n_views):
        k1, k2 = jax.random.split(kx2[v])
        inp_bi[v] = (jax.random.normal(k1, (batch, bi_in_dims[v][0]), jnp.float32),
                     jax.random.normal(k2, (batch, bi_in_dims[v][1]), jnp.float32))

    net_bi_f32 = TrustNetPallas(kmodel2, n_views, bi_in_dims, out_dim, bi=True,
                                compute_dtype=jnp.float32)
    ev_bi = net_bi_f32(inp_bi)
    jax.block_until_ready(ev_bi)
    for v in range(n_views):
        ref = _ref_feater(inp_bi[v][0], inp_bi[v][1], *net_bi_f32.params[v])
        assert ev_bi[v].shape == (batch, out_dim)
        assert jnp.allclose(ev_bi[v], ref, atol=2e-2, rtol=2e-2), f"f32 bi view {v} mismatch"

    net_bi_bf16 = TrustNetPallas(kmodel2, n_views, bi_in_dims, out_dim, bi=True)
    ev_bi16 = net_bi_bf16(inp_bi)
    jax.block_until_ready(ev_bi16)
    for v in range(n_views):
        ref = _ref_feater(inp_bi[v][0], inp_bi[v][1], *net_bi_bf16.params[v])
        assert ev_bi16[v].shape == (batch, out_dim)
        assert jnp.allclose(ev_bi16[v], ref, atol=7e-2, rtol=7e-2), f"bf16 bi view {v} mismatch"

    print("KERNEL_OK")
</pallas_src>

<mosaic_0001>
module attributes {stable_mosaic.version = 11 : i64} {
  func.func @_linear_softplus_kernel(%arg0: i32, %arg1: memref<8x56xf32, #tpu.memory_space<vmem>>, %arg2: memref<56x128xf32, #tpu.memory_space<vmem>>, %arg3: memref<1x128xf32, #tpu.memory_space<vmem>>, %arg4: memref<8x128xf32, #tpu.memory_space<vmem>>) attributes {dimension_semantics = [#tpu.dimension_semantics<parallel>], iteration_bounds = array<i64: 1>, scalar_prefetch = 0 : i64, scratch_operands = 0 : i64, tpu.core_type = #tpu.core_type<tc>, window_params = [{transform_indices = @transform_0, window_bounds = array<i64: 8, 56>}, {pipeline_mode = #tpu.pipeline_mode<synchronous>, transform_indices = @transform_1, window_bounds = array<i64: 56, 128>}, {pipeline_mode = #tpu.pipeline_mode<synchronous>, transform_indices = @transform_2, window_bounds = array<i64: 1, 128>}, {transform_indices = @transform_3, window_bounds = array<i64: 8, 128>}]} {
    %c0 = arith.constant 0 : index
    %c0_0 = arith.constant 0 : index
    %0 = vector.load %arg1[%c0, %c0_0] : memref<8x56xf32, #tpu.memory_space<vmem>>, vector<8x56xf32>
    %c0_1 = arith.constant 0 : index
    %c0_2 = arith.constant 0 : index
    %1 = vector.load %arg2[%c0_1, %c0_2] : memref<56x128xf32, #tpu.memory_space<vmem>>, vector<56x128xf32>
    %cst = arith.constant dense<0.000000e+00> : vector<8x128xf32>
    %2 = tpu.matmul %0, %1, %cst {dimension_numbers = #tpu.dot_dimension_numbers<[1], [0], [0], [1], [0, 0, 1, 1], [], []>} : vector<8x56xf32>, vector<56x128xf32>, vector<8x128xf32> -> vector<8x128xf32>
    %c0_3 = arith.constant 0 : index
    %c0_4 = arith.constant 0 : index
    %3 = vector.load %arg3[%c0_3, %c0_4] : memref<1x128xf32, #tpu.memory_space<vmem>>, vector<1x128xf32>
    %4 = vector.broadcast %3 : vector<1x128xf32> to vector<8x128xf32>
    %5 = arith.addf %2, %4 : vector<8x128xf32>
    %cst_5 = arith.constant 0.000000e+00 : f32
    %6 = vector.broadcast %cst_5 : f32 to vector<8x128xf32>
    %7 = arith.maximumf %5, %6 : vector<8x128xf32>
    %8 = math.absf %5 : vector<8x128xf32>
    %cst_6 = arith.constant 0.000000e+00 : f32
    %9 = vector.broadcast %cst_6 : f32 to vector<8x128xf32>
    %10 = arith.subf %9, %8 : vector<8x128xf32>
    %11 = math.exp %10 : vector<8x128xf32>
    %12 = math.log1p %11 : vector<8x128xf32>
    %13 = arith.addf %7, %12 : vector<8x128xf32>
    %c0_7 = arith.constant 0 : index
    %c0_8 = arith.constant 0 : index
    %14 = vector.load %arg4[%c0_7, %c0_8] : memref<8x128xf32, #tpu.memory_space<vmem>>, vector<8x128xf32>
    tpu.vector_store %arg4[%c0_7, %c0_8], %13 {strides = array<i32>} : memref<8x128xf32, #tpu.memory_space<vmem>>, vector<8x128xf32>,
    return
  }
  func.func @transform_0(%arg0: i32) -> (i32, i32) {
    %c0_i32 = arith.constant 0 : i32
    %c0_i32_0 = arith.constant 0 : i32
    return %arg0, %c0_i32 : i32, i32
  }
  func.func @transform_1(%arg0: i32) -> (i32, i32) {
    %c0_i32 = arith.constant 0 : i32
    %c0_i32_0 = arith.constant 0 : i32
    %c0_i32_1 = arith.constant 0 : i32
    return %c0_i32, %c0_i32_0 : i32, i32
  }
  func.func @transform_2(%arg0: i32) -> (i32, i32) {
    %c0_i32 = arith.constant 0 : i32
    %c0_i32_0 = arith.constant 0 : i32
    %c0_i32_1 = arith.constant 0 : i32
    return %c0_i32, %c0_i32_0 : i32, i32
  }
  func.func @transform_3(%arg0: i32) -> (i32, i32) {
    %c0_i32 = arith.constant 0 : i32
    %c0_i32_0 = arith.constant 0 : i32
    return %arg0, %c0_i32 : i32, i32
  }
}

</mosaic_0001>

<bundles_post_ra>
// kernel: tpu_custom_call.1
= control target key start
LH: loop header
LB: loop body
LE: loop exit
PB: predicated region body
PF: predicated region fallthrough
CT: control target
= control target key end

     0   :  { %8 = vsyncpa [#allocation3], 0  ;;  %s356_s0 = inlined_call_operand.hbm [shape: f32[8,56], index: 0, kind: input, shape index: {}]   ;;  %s357_s1 = inlined_call_operand.hbm [shape: f32[56,128], index: 1, kind: input, shape index: {}]   ;;  %s358_s2 = inlined_call_operand.vmem [shape: f32[1,128], index: 2, kind: input, shape index: {}]   ;;  %s359_s3 = inlined_call_operand.hbm [shape: f32[8,128], index: 3, kind: output, shape index: {}]  }
   0x1   :  { %9 = vsyncpa [#allocation6], 0 }
   0x2   :  { %10 = vsyncpa [#allocation4], 0  ;;  %s282_s12 = smov [#allocation2]   ;;  %s283_s14 = smov [#allocation5]  }
   0x3   :  { %s17_s13 = sshll.u32 %s282_s12, 4  ;;  %s26_s15 = sshll.u32 %s283_s14, 4  ;;  %s18_s13 = int_to_ptr.vmem [resolvable:$true] %s17_s13  ;;  %s310_s15 = int_to_ptr.vmem [resolvable:$true] %s26_s15 }
   0x4   :  { %s210_s18 = scalar_lea.hbm %s356_s0, 128 }
   0x5   :  { %p211_p0 = scmp.ne.s32.totalorder %s356_s0, %s210_s18  ;;  %p214_p1 = scmp.lt.u32.totalorder %s210_s18, %s356_s0 }
   0x7   :  { %p216_p2 = pnand %p214_p1, %p211_p0 }
   0x9   :  { %219 = shalt.err (!%p216_p2)
}
   0xa   :  { %s220_s23 = scalar_lea.vmem %s18_s13, 128  ;;  %p225_p4 = scmp.lt.s32.totalorder %s18_s13, %s18_s13 }
   0xb   :  { %p221_p3 = scmp.ne.s32.totalorder %s18_s13, %s220_s23  ;;  %p226_p5 = scmp.lt.s32.totalorder %s220_s23, %s220_s23 }
   0xd   :  { %p227_p6 = por %p226_p5, %p225_p4 }
   0xf   :  { %p228_p7 = pnand %p227_p6, %p221_p3 }
  0x11   :  { %231 = shalt.err (!%p228_p7)
}
  0x12   :  { %20 = dma.hbm_to_vmem [thread:$0]  %s356_s0, 128, %s18_s13, [#allocation3]  }
  0x13   :  { %s232_s28 = scalar_lea.hbm %s357_s1, 896 }
  0x14   :  { %p233_p8 = scmp.ne.s32.totalorder %s357_s1, %s232_s28  ;;  %p236_p9 = scmp.lt.u32.totalorder %s232_s28, %s357_s1 }
  0x16   :  { %p238_p10 = pnand %p236_p9, %p233_p8 }
  0x18   :  { %241 = shalt.err (!%p238_p10)
}
  0x19   :  { %s242_s6 = scalar_lea.vmem %s310_s15, 896  ;;  %p247_p12 = scmp.lt.s32.totalorder %s310_s15, %s310_s15 }
  0x1a   :  { %p243_p11 = scmp.ne.s32.totalorder %s310_s15, %s242_s6  ;;  %p248_p13 = scmp.lt.s32.totalorder %s242_s6, %s242_s6 }
  0x1c   :  { %p249_p0 = por %p248_p13, %p247_p12 }
  0x1e   :  { %p250_p1 = pnand %p249_p0, %p243_p11 }
  0x20   :  { %253 = shalt.err (!%p250_p1)
}
  0x21   :  { %s284_s0 = smov 128   ;;  %s285_s7 = smov 8  }
  0x22   :  { %32 = dma.hbm_to_vmem [thread:$0]  %s357_s1, 896, %s310_s15, [#allocation6], %s284_s0, %s284_s0, %s285_s7  }
  0x23   :  { %276 = dma.done.wait [#allocation3], 128  }
  0x24   :  { %277 = vsyncadd [#allocation3], 4294967168 }
  0x25   :  { %278 = dma.done.wait [#allocation6], 896  }
  0x26   :  { %279 = vsyncadd [#allocation6], 4294966400  ;;  %v286_v0 = vmov 0.0|0.0   ;;  %vm287_vm0 = vmmov 0   ;;  %v288_v1 = vmov 0.0   ;;  %v42_v2 = vld [vmem:[#allocation5] sm:$0xff] }
  0x27   :  { %189 = vmatprep.subr.bf16.mxu0 %v286_v0  ;;  %186 = vmatprep.mubr.msk.f32.mxu0 %vm287_vm0, %v288_v1  ;;  %v43_v3 = vld [vmem:[#allocation5 + $0x8] sm:$0xff]  ;;  %v44_v4 = vld [vmem:[#allocation5 + $0x10] sm:$0xff]  ;;  %v45_v6 = vld [vmem:[#allocation5 + $0x18] sm:$0xff]  ;;  %vm56_vm1 = vcmask 457728   ;;  %s289_s11 = smov [#allocation7]  }
  0x28   :  { %v190_v5 = vpack.c.bf16 %v43_v3, %v42_v2  ;;  %v193_v7 = vpack.c.bf16 %v45_v6, %v44_v4  ;;  %v46_v8 = vld [vmem:[#allocation5 + $0x20] sm:$0xff]  ;;  %v47_v9 = vld [vmem:[#allocation5 + $0x28] sm:$0xff]  ;;  %v48_v11 = vld [vmem:[#allocation5 + $0x30] sm:$0xff]  ;;  %s152_s12 = sshll.u32 %s289_s11, 4  ;;  %s153_s12 = int_to_ptr.vmem [resolvable:$true] %s152_s12 }
  0x29   :  { %v196_v10 = vpack.c.bf16 %v47_v9, %v46_v8  ;;  %v41_v12 = vld [vmem:[#allocation2] sm:$0xff]  ;;  %p259_p3 = scmp.lt.s32.totalorder %s153_s12, %s153_s12 }
  0x2a   :  { %191 = vmatpush3.bf16.msra.mxu0 %v190_v5  ;;  %v162_v13 = vld [vmem:[%s358_s2] ss:$0 sm:$0xff]  ;;  %s254_s2 = scalar_lea.vmem %s153_s12, 128 }
  0x2b   :  { %192 = vmatprep.subr.bf16.mxu0 %v286_v0  ;;  %p255_p2 = scmp.ne.s32.totalorder %s153_s12, %s254_s2  ;;  %p260_p4 = scmp.lt.s32.totalorder %s254_s2, %s254_s2 }
  0x2d   :  { %p261_p5 = por %p260_p4, %p259_p3 }
  0x2e   :  { %194 = vmatpush3.bf16.msra.mxu0 %v193_v7 }
  0x2f   :  { %195 = vmatprep.subr.bf16.mxu0 %v286_v0  ;;  %p262_p6 = pnand %p261_p5, %p255_p2 }
  0x32   :  { %197 = vmatpush3.bf16.msra.mxu0 %v196_v10 }
  0x33   :  { %184 = vmatprep.subr.mxu0 %v288_v1 }
  0x36   :  { %185 = vmatpush3.msra.mxu0 %v48_v11 }
  0x37   :  { %187 = vmatmul.mubr.msk.f32.vlgmr.msra.gmra.mrb[0].mxu0 %vm56_vm1, %v41_v12 }
 0x10a   :  { %v126_v14 = vpop.f32.mrb[0].mxu0 }
 0x10b   :  { %v127_v15 = vadd.f32 %v162_v13, %v126_v14  ;;  %v188_v16 = vpop.f32.mrb[1].mxu0 }
 0x10d   :  { %v131_v17 = vand.u32 2147483647, %v127_v15  ;;  %v130_v28 = vmax.f32 %v127_v15, 0.0 }
 0x10f   :  { %v132_v18 = vsub.f32 0.0, %v131_v17 }
 0x111   :  { %v133_v19 = vmul.f32 1.442695, %v132_v18 }
 0x113   :  { %206 = vpow2.f32 %v133_v19 }
 0x11d   :  { %v207_v20 = vpop.eup %206 }
 0x11e   :  { %v135_v21 = vadd.f32 1.0, %v207_v20  ;;  %v138_v22 = vmul.f32 -0.5, %v207_v20  ;;  %v141_v24 = vand.u32 2147483647, %v207_v20 }
 0x120   :  { %208 = vlog2.f32 %v135_v21  ;;  %v139_v23 = vadd.f32 1.0, %v138_v22  ;;  %vm142_vm2 = vcmp.lt.f32.partialorder %v141_v24, 0.0004427343 }
 0x122   :  { %v140_v27 = vmul.f32 %v207_v20, %v139_v23 }
 0x12a   :  { %v209_v25 = vpop.eup %208 }
 0x12b   :  { %v137_v26 = vmul.f32 0.6931472, %v209_v25 }
 0x12d   :  { %v143_v29 = vsel %vm142_vm2, %v140_v27, %v137_v26 }
 0x12e   :  { %v144_v30 = vadd.f32 %v143_v29, %v130_v28 }
 0x130   :  { %145 = vst [vmem:[#allocation7] sm:$0xff] %v144_v30 }
 0x131   :  { %265 = shalt.err (!%p262_p6)
}
 0x132   :  { %s266_s15 = scalar_lea.hbm %s359_s3, 128 }
 0x133   :  { %p267_p7 = scmp.ne.s32.totalorder %s359_s3, %s266_s15  ;;  %p270_p8 = scmp.lt.u32.totalorder %s266_s15, %s359_s3 }
 0x135   :  { %p272_p9 = pnand %p270_p8, %p267_p7 }
 0x137   :  { %275 = shalt.err (!%p272_p9)
}
 0x138   :  { %155 = dma.vmem_to_hbm [thread:$0]  %s153_s12, 128, %s359_s3, [#allocation4]  }
 0x139   :  { %280 = dma.done.wait [#allocation4], 128  }
 0x13a   :  { %281 = vsyncadd [#allocation4], 4294967168 }
 0x13b   :  { %159 = vsyncpa [#allocation3], 1 }
 0x13c   :  { %160 = vsyncpa [#allocation6], 1 }
 0x13d   :  { %161 = vsyncpa [#allocation4], 1 }

</bundles_post_ra>
